<compile_context>
chip_gen: v6e
topology: v6e:2x2x1
jax: 0.10.0
libtpu: 0.0.40
codegen_flags: <defaults>
</compile_context>

<pallas_src>
import math

import jax
import jax.numpy as jnp
from jax import lax
from jax.experimental import pallas as pl
from jax.experimental.pallas import tpu as pltpu


# ----------------------------------------------------------------------------
# helpers
# ----------------------------------------------------------------------------
def _round_up(x, m):
    return (x + m - 1) // m * m


def _pack_conv_taps(w, c_in_p, c_out_p):
    """torch (Cout, Cin, K) conv1d weight -> (K, Cout_p, Cin_p).

    One (Cout_p, Cin_p) matmul weight per tap, so the kernel never lane-slices
    a packed weight (static leading-axis index instead)."""
    c_out, c_in, k = w.shape
    wp = jnp.zeros((k, c_out_p, c_in_p), jnp.float32)
    return wp.at[:, :c_out, :c_in].set(
        jnp.transpose(w.astype(jnp.float32), (2, 0, 1)))


def _pack_bias(b, c_out_p):
    c_out = b.shape[0]
    return jnp.zeros((c_out_p, 1), jnp.float32).at[:c_out, 0].set(b.astype(jnp.float32))


def _pack_downsample(w, c_in_p, c_out_p):
    """torch (Cout, Cin, 1) 1x1 conv weight -> (Cout_p, Cin_p)."""
    c_out, c_in, _ = w.shape
    wp = jnp.zeros((c_out_p, c_in_p), jnp.float32)
    return wp.at[:c_out, :c_in].set(w[:, :, 0].astype(jnp.float32))


def _vmem_physical_bytes():
    try:
        info = pltpu.get_tpu_info()
        for attr in ("vmem_capacity_bytes", "vmem_bytes", "vmem_size_bytes"):
            v = getattr(info, attr, None)
            if v:
                return int(v)
    except Exception:
        pass
    return 64 * 2 ** 20          # conservative: v7x per-TC physical VMEM


def _working_set_bytes(tile_l, r0_pad, c0p, c_maxp, c_lastp, weight_words):
    win = tile_l + r0_pad
    words = (2 * c0p * win            # manual double-buffered halo window
             + 2 * c_lastp * tile_l   # auto-pipelined output block (x2)
             + 2 * weight_words       # weights (worst case x2)
             + 8 * c_maxp * win)      # live intermediates (cur/h1/h2/rolled taps)
    return 4 * words


# ----------------------------------------------------------------------------
# fused TCN kernel
# ----------------------------------------------------------------------------
def _make_tcn_kernel(metas, n_w, tile_l, r0_pad, win):
    """metas: per-layer dicts with K, dilation, pad, has_ds (all static)."""

    def conv_taps(x, w_ref, b_ref, k_taps, d, p):
        # Per-tap matmul accumulation (no im2col concat).  Tap k needs the input
        # shifted right by s = p - k*d lanes; the shift runs on the XLU.
        acc = None
        for k in range(k_taps):
            s = p - k * d
            xk = x if s == 0 else pltpu.roll(x, shift=s, axis=1)
            t = jnp.dot(w_ref[k], xk, preferred_element_type=jnp.float32)
            acc = t if acc is None else acc + t
        return acc + b_ref[...]

    def kernel(*refs):
        x_hbm = refs[0]
        w_refs = refs[1:1 + n_w]
        out_ref = refs[1 + n_w]
        xbuf = refs[2 + n_w]          # VMEM (2, c0p, win) — manual double buffer
        sem = refs[3 + n_w]           # DMA semaphores (2,)

        b = pl.program_id(0)
        j = pl.program_id(1)
        n_t = pl.num_programs(1)
        slot = lax.rem(j, 2)

        def start_fetch(jj, s):
            off = pl.multiple_of(jj * tile_l, 128)
            pltpu.make_async_copy(
                x_hbm.at[b, :, pl.ds(off, win)], xbuf.at[s], sem.at[s]).start()

        # First tile of this batch row: no prefetch from a previous step exists.
        @pl.when(j == 0)
        def _():
            start_fetch(0, slot)

        # Wait for this tile's halo window (issued at the previous step for j>0).
        pltpu.make_async_copy(
            x_hbm.at[b, :, pl.ds(0, win)], xbuf.at[slot], sem.at[slot]).wait()

        # Prefetch the next tile of this batch row; overlaps the compute below.
        @pl.when(j + 1 < n_t)
        def _():
            start_fetch(j + 1, 1 - slot)

        cur = xbuf[slot]                     # (c0p, win), f32
        start = j * tile_l - r0_pad          # absolute seq position of column 0

        # Hoisted causal mask: 1.0 at positions >= 0, 0.0 left of t=0.  The
        # column -> position map is constant across layers (fixed widths).
        pos = start + lax.broadcasted_iota(jnp.int32, (1, win), 1)
        maskf = (pos >= 0).astype(jnp.float32)

        wi = 0
        for m in metas:
            k_taps, d, p = m["K"], m["dilation"], m["pad"]
            w1 = w_refs[wi]
            b1 = w_refs[wi + 1]
            w2 = w_refs[wi + 2]
            b2 = w_refs[wi + 3]
            wi += 4

            # conv1 -> relu -> causal zeros left of t=0 (dropout == identity)
            h1 = jnp.maximum(conv_taps(cur, w1, b1, k_taps, d, p), 0.0) * maskf
            # conv2 -> relu
            h2 = jnp.maximum(conv_taps(h1, w2, b2, k_taps, d, p), 0.0)
            # residual (+ optional 1x1 downsample) -> relu
            if m["has_ds"]:
                wd = w_refs[wi]
                bd = w_refs[wi + 1]
                wi += 2
                res = jnp.dot(wd[...], cur, preferred_element_type=jnp.float32) + bd[...]
            else:
                res = cur
            cur = jnp.maximum(h2 + res, 0.0) * maskf

        # Lane-dense store: the last tile_l columns (128-aligned slice).
        out_ref[...] = cur[:, r0_pad:]

    return kernel


# ----------------------------------------------------------------------------
# wrapper
# ----------------------------------------------------------------------------
def tcn_forward(x_ncl, params, input_channels, kernel_size, tile_l=None):
    """x_ncl: (batch, channels, seq_len) like the PyTorch module; returns NCL."""
    if x_ncl.ndim != 3:
        raise ValueError(f"TCN received non-3D input: {x_ncl.shape}")
    if x_ncl.shape[1] != input_channels:
        if x_ncl.shape[2] == input_channels:
            x_ncl = jnp.transpose(x_ncl, (0, 2, 1))
        else:
            raise RuntimeError(
                f"TCN input channel mismatch: got {x_ncl.shape[1]}, "
                f"expected {input_channels}")

    x = x_ncl.astype(jnp.float32)
    B, _, L = x.shape
    n_layers = len(params)
    K = kernel_size

    pads = [(K - 1) * (2 ** i) for i in range(n_layers)]
    r0 = 2 * sum(pads)                     # total causal left context
    r0_pad = _round_up(r0, 128) if r0 > 0 else 0

    c0 = input_channels
    c0p = _round_up(c0, 8)

    # ---- pack weights (tap-separated matmul form) --------------------------
    flat, metas = [], []
    cinp = c0p
    c_maxp = c0p
    for i, p in enumerate(params):
        c_out = p["w1"].shape[0]
        coutp = _round_up(c_out, 8)
        c_maxp = max(c_maxp, coutp)
        d = 2 ** i
        pad = (K - 1) * d
        has_ds = p["wd"] is not None
        flat += [
            _pack_conv_taps(p["w1"], cinp, coutp), _pack_bias(p["b1"], coutp),
            _pack_conv_taps(p["w2"], coutp, coutp), _pack_bias(p["b2"], coutp),
        ]
        if has_ds:
            flat += [_pack_downsample(p["wd"], cinp, coutp),
                     _pack_bias(p["bd"], coutp)]
        metas.append(dict(K=K, dilation=d, pad=pad, has_ds=has_ds))
        cinp = coutp

    c_last = params[-1]["w1"].shape[0]
    c_lastp = cinp
    n_w = len(flat)
    weight_words = sum(int(w.size) for w in flat)

    # ---- tile size & VMEM budget (per-generation) ---------------------------
    phys = _vmem_physical_bytes()
    budget = min(int(phys * 0.6), 80 * 2 ** 20)    # never ask for ~all of VMEM

    lp128 = _round_up(max(L, 1), 128)
    if tile_l is None:
        tile_l = 128
        cands = sorted({min(lp128, 4096), 2048, 1536, 1024, 768, 512, 384, 256, 128},
                       reverse=True)
        for cand in cands:
            if cand > lp128:
                continue
            if 2 * _working_set_bytes(cand, r0_pad, c0p, c_maxp, c_lastp,
                                      weight_words) <= budget:
                tile_l = cand
                break
    tile_l = max(128, _round_up(tile_l, 128))
    n_t = (L + tile_l - 1) // tile_l
    LP = n_t * tile_l
    win = tile_l + r0_pad

    ws = _working_set_bytes(tile_l, r0_pad, c0p, c_maxp, c_lastp, weight_words)
    vmem_limit = int(min(max(2 * ws + (4 << 20), 16 << 20), int(phys * 0.75)))

    # channel pad (sublane multiple), left causal halo (lane multiple), right pad
    xp = jnp.pad(x, ((0, 0), (0, c0p - c0), (r0_pad, LP - L)))

    # ---- cost estimate ------------------------------------------------------
    flops = 0
    cin_iter = c0p
    for i, p in enumerate(params):
        coutp = _round_up(p["w1"].shape[0], 8)
        has_ds = p["wd"] is not None
        flops += 2 * B * n_t * win * (K * cin_iter * coutp + K * coutp * coutp
                                      + (cin_iter * coutp if has_ds else 0))
        cin_iter = coutp
    bytes_accessed = (B * n_t * c0p * win * 4       # halo'd input reads
                      + B * c_lastp * LP * 4        # output writes
                      + weight_words * 4)

    kernel = _make_tcn_kernel(metas, n_w, tile_l, r0_pad, win)
    vmem_spec = pl.BlockSpec(memory_space=pltpu.MemorySpace.VMEM)

    out = pl.pallas_call(
        kernel,
        out_shape=jax.ShapeDtypeStruct((B, c_lastp, LP), jnp.float32),
        grid=(B, n_t),
        in_specs=[pl.BlockSpec(memory_space=pl.ANY)] + [vmem_spec] * n_w,
        out_specs=pl.BlockSpec((None, c_lastp, tile_l), lambda b, j: (b, 0, j)),
        scratch_shapes=[pltpu.VMEM((2, c0p, win), jnp.float32),
                        pltpu.SemaphoreType.DMA((2,))],
        compiler_params=pltpu.CompilerParams(
            dimension_semantics=("parallel", "arbitrary"),
            vmem_limit_bytes=vmem_limit),
        cost_estimate=pl.CostEstimate(flops=int(flops), transcendentals=0,
                                      bytes_accessed=int(bytes_accessed)),
    )(xp, *flat)

    return out[:, :c_last, :L]


# ----------------------------------------------------------------------------
# TCN parameter init (deterministic, mirrors the PyTorch __init__ shapes)
# ----------------------------------------------------------------------------
def init_tcn_params(key, input_channels, num_filters, num_layers, kernel_size):
    params = []
    in_ch = input_channels
    for _ in range(num_layers):
        out_ch = num_filters
        key, k1, k2, k3 = jax.random.split(key, 4)
        std1 = math.sqrt(2.0 / (in_ch * kernel_size))   # kaiming fan_in, relu
        std2 = math.sqrt(2.0 / (out_ch * kernel_size))
        p = {
            "w1": std1 * jax.random.normal(k1, (out_ch, in_ch, kernel_size), jnp.float32),
            "b1": jnp.zeros((out_ch,), jnp.float32),
            "w2": std2 * jax.random.normal(k2, (out_ch, out_ch, kernel_size), jnp.float32),
            "b2": jnp.zeros((out_ch,), jnp.float32),
        }
        if in_ch != out_ch:
            stdd = math.sqrt(2.0 / in_ch)
            p["wd"] = stdd * jax.random.normal(k3, (out_ch, in_ch, 1), jnp.float32)
            p["bd"] = jnp.zeros((out_ch,), jnp.float32)
        else:
            p["wd"] = None
            p["bd"] = None
        params.append(p)
        in_ch = out_ch
    return params


# ----------------------------------------------------------------------------
# Pure-JAX reference (independent check via lax.conv_general_dilated)
# ----------------------------------------------------------------------------
def _ref_block(x, p, kernel_size, dilation):
    pad = (kernel_size - 1) * dilation

    def conv(inp, w, b, dil, padding):
        out = lax.conv_general_dilated(
            inp, w, window_strides=(1,), padding=[(padding, 0)],
            rhs_dilation=(dil,), dimension_numbers=("NCH", "OIH", "NCH"))
        return out + b[None, :, None]

    h1 = jnp.maximum(conv(x, p["w1"], p["b1"], dilation, pad), 0.0)
    h2 = jnp.maximum(conv(h1, p["w2"], p["b2"], dilation, pad), 0.0)
    res = x if p["wd"] is None else conv(x, p["wd"], p["bd"], 1, 0)
    return jnp.maximum(h2 + res, 0.0)


def tcn_reference(x_ncl, params, kernel_size):
    h = x_ncl.astype(jnp.float32)
    for i, p in enumerate(params):
        h = _ref_block(h, p, kernel_size, 2 ** i)
    return h


# ----------------------------------------------------------------------------
if __name__ == "__main__":
    # TCN(input_channels=4, num_filters=8, num_layers=2, kernel_size=3, dropout=0.2)
    input_channels, num_filters, num_layers, kernel_size = 4, 8, 2, 3
    B, L = 2, 16

    key = jax.random.PRNGKey(0)
    key, xkey = jax.random.split(key)
    x = jax.random.normal(xkey, (B, input_channels, L), jnp.float32)   # NCL
    params = init_tcn_params(key, input_channels, num_filters, num_layers, kernel_size)

    out = jax.block_until_ready(tcn_forward(x, params, input_channels, kernel_size))
    assert out.shape == (B, num_filters, L), out.shape
    ref = jax.block_until_ready(tcn_reference(x, params, kernel_size))
    err = float(jnp.abs(out - ref).max())
    assert jnp.allclose(out, ref, atol=1e-3, rtol=1e-3), err

    # Deeper dilation stack + longer L: exercises the auto tile chooser, the
    # start<0 causal mask, and (with tile_l=128) the multi-tile prefetch chain.
    ic2, nf2, nl2, ks2 = 4, 8, 3, 3
    B2, L2 = 2, 300
    key, xkey2, pkey2 = jax.random.split(key, 3)
    x2 = jax.random.normal(xkey2, (B2, ic2, L2), jnp.float32)
    params2 = init_tcn_params(pkey2, ic2, nf2, nl2, ks2)
    ref2 = jax.block_until_ready(tcn_reference(x2, params2, ks2))

    out2a = jax.block_until_ready(tcn_forward(x2, params2, ic2, ks2))              # auto tile
    out2b = jax.block_until_ready(tcn_forward(x2, params2, ic2, ks2, tile_l=128))  # 3 tiles
    for o in (out2a, out2b):
        assert o.shape == (B2, nf2, L2), o.shape
        e = float(jnp.abs(o - ref2).max())
        assert jnp.allclose(o, ref2, atol=1e-3, rtol=1e-3), e

    print("KERNEL_OK")
</pallas_src>

<mosaic_0001>
module attributes {stable_mosaic.version = 11 : i64} {
  func.func @kernel(%arg0: i32, %arg1: i32, %arg2: memref<2x8x256xf32, #tpu.memory_space<any>>, %arg3: memref<3x8x8xf32, #tpu.memory_space<vmem>>, %arg4: memref<8x1xf32, #tpu.memory_space<vmem>>, %arg5: memref<3x8x8xf32, #tpu.memory_space<vmem>>, %arg6: memref<8x1xf32, #tpu.memory_space<vmem>>, %arg7: memref<8x8xf32, #tpu.memory_space<vmem>>, %arg8: memref<8x1xf32, #tpu.memory_space<vmem>>, %arg9: memref<3x8x8xf32, #tpu.memory_space<vmem>>, %arg10: memref<8x1xf32, #tpu.memory_space<vmem>>, %arg11: memref<3x8x8xf32, #tpu.memory_space<vmem>>, %arg12: memref<8x1xf32, #tpu.memory_space<vmem>>, %arg13: memref<1x8x128xf32, #tpu.memory_space<vmem>>, %arg14: memref<2x8x256xf32, #tpu.memory_space<vmem>>, %arg15: memref<2x!tpu.dma_semaphore, #tpu.memory_space<semaphore_mem>>) attributes {dimension_semantics = [#tpu.dimension_semantics<parallel>, #tpu.dimension_semantics<arbitrary>], iteration_bounds = array<i64: 2, 1>, scalar_prefetch = 0 : i64, scratch_operands = 2 : i64, tpu.core_type = #tpu.core_type<tc>, window_params = [{}, {pipeline_mode = #tpu.pipeline_mode<synchronous>, transform_indices = @transform_1, window_bounds = array<i64: 3, 8, 8>}, {pipeline_mode = #tpu.pipeline_mode<synchronous>, transform_indices = @transform_2, window_bounds = array<i64: 8, 1>}, {pipeline_mode = #tpu.pipeline_mode<synchronous>, transform_indices = @transform_3, window_bounds = array<i64: 3, 8, 8>}, {pipeline_mode = #tpu.pipeline_mode<synchronous>, transform_indices = @transform_4, window_bounds = array<i64: 8, 1>}, {pipeline_mode = #tpu.pipeline_mode<synchronous>, transform_indices = @transform_5, window_bounds = array<i64: 8, 8>}, {pipeline_mode = #tpu.pipeline_mode<synchronous>, transform_indices = @transform_6, window_bounds = array<i64: 8, 1>}, {pipeline_mode = #tpu.pipeline_mode<synchronous>, transform_indices = @transform_7, window_bounds = array<i64: 3, 8, 8>}, {pipeline_mode = #tpu.pipeline_mode<synchronous>, transform_indices = @transform_8, window_bounds = array<i64: 8, 1>}, {pipeline_mode = #tpu.pipeline_mode<synchronous>, transform_indices = @transform_9, window_bounds = array<i64: 3, 8, 8>}, {pipeline_mode = #tpu.pipeline_mode<synchronous>, transform_indices = @transform_10, window_bounds = array<i64: 8, 1>}, {transform_indices = @transform_11, window_bounds = array<i64: 1, 8, 128>}]} {
    %c2_i32 = arith.constant 2 : i32
    %0 = arith.remsi %arg1, %c2_i32 : i32
    %c0_i32 = arith.constant 0 : i32
    %1 = arith.cmpi eq, %arg1, %c0_i32 : i32
    %2 = arith.extui %1 : i1 to i32
    %c0_i32_0 = arith.constant 0 : i32
    %3 = arith.cmpi ne, %2, %c0_i32_0 : i32
    scf.if %3 {
      %c0_i32_84 = arith.constant 0 : i32
      %121 = tpu.assume_multiple %c0_i32_84, 128 : i32
      %c0_i32_85 = arith.constant 0 : i32
      %122 = tpu.memref_slice %arg2[%arg0, %c0_i32_85, %121] : memref<2x8x256xf32, #tpu.memory_space<any>> -> memref<1x8x256xf32, #tpu.memory_space<any>>
      %123 = tpu.memref_squeeze %122 : memref<1x8x256xf32, #tpu.memory_space<any>> -> memref<8x256xf32, #tpu.memory_space<any>>
      %c0_i32_86 = arith.constant 0 : i32
      %c0_i32_87 = arith.constant 0 : i32
      %124 = tpu.memref_slice %arg14[%0, %c0_i32_86, %c0_i32_87] : memref<2x8x256xf32, #tpu.memory_space<vmem>> -> memref<1x8x256xf32, #tpu.memory_space<vmem>>
      %125 = tpu.memref_squeeze %124 : memref<1x8x256xf32, #tpu.memory_space<vmem>> -> memref<8x256xf32, #tpu.memory_space<vmem>>
      %126 = tpu.memref_slice %arg15[%0] : memref<2x!tpu.dma_semaphore, #tpu.memory_space<semaphore_mem>> -> memref<1x!tpu.dma_semaphore, #tpu.memory_space<semaphore_mem>>
      %127 = tpu.memref_squeeze %126 : memref<1x!tpu.dma_semaphore, #tpu.memory_space<semaphore_mem>> -> memref<!tpu.dma_semaphore, #tpu.memory_space<semaphore_mem>>
      tpu.enqueue_dma source(%123 : memref<8x256xf32, #tpu.memory_space<any>>) target(%125 : memref<8x256xf32, #tpu.memory_space<vmem>>) target_semaphore(%127 : memref<!tpu.dma_semaphore, #tpu.memory_space<semaphore_mem>>)
    } else {
    }
    %c0_i32_1 = arith.constant 0 : i32
    %c0_i32_2 = arith.constant 0 : i32
    %4 = tpu.memref_slice %arg2[%arg0, %c0_i32_1, %c0_i32_2] : memref<2x8x256xf32, #tpu.memory_space<any>> -> memref<1x8x256xf32, #tpu.memory_space<any>>
    %5 = tpu.memref_squeeze %4 : memref<1x8x256xf32, #tpu.memory_space<any>> -> memref<8x256xf32, #tpu.memory_space<any>>
    %c0_i32_3 = arith.constant 0 : i32
    %c0_i32_4 = arith.constant 0 : i32
    %6 = tpu.memref_slice %arg14[%0, %c0_i32_3, %c0_i32_4] : memref<2x8x256xf32, #tpu.memory_space<vmem>> -> memref<1x8x256xf32, #tpu.memory_space<vmem>>
    %7 = tpu.memref_squeeze %6 : memref<1x8x256xf32, #tpu.memory_space<vmem>> -> memref<8x256xf32, #tpu.memory_space<vmem>>
    %8 = tpu.memref_slice %arg15[%0] : memref<2x!tpu.dma_semaphore, #tpu.memory_space<semaphore_mem>> -> memref<1x!tpu.dma_semaphore, #tpu.memory_space<semaphore_mem>>
    %9 = tpu.memref_squeeze %8 : memref<1x!tpu.dma_semaphore, #tpu.memory_space<semaphore_mem>> -> memref<!tpu.dma_semaphore, #tpu.memory_space<semaphore_mem>>
    tpu.wait_dma2 semaphore(%9 : memref<!tpu.dma_semaphore, #tpu.memory_space<semaphore_mem>>) src(%5 : memref<8x256xf32, #tpu.memory_space<any>>) dst(%7 : memref<8x256xf32, #tpu.memory_space<vmem>>)
    %c1_i32 = arith.constant 1 : i32
    %10 = arith.addi %arg1, %c1_i32 : i32
    %c1_i32_5 = arith.constant 1 : i32
    %11 = arith.cmpi slt, %10, %c1_i32_5 : i32
    %12 = arith.extui %11 : i1 to i32
    %c0_i32_6 = arith.constant 0 : i32
    %13 = arith.cmpi ne, %12, %c0_i32_6 : i32
    scf.if %13 {
      %c1_i32_84 = arith.constant 1 : i32
      %121 = arith.addi %arg1, %c1_i32_84 : i32
      %c1_i32_85 = arith.constant 1 : i32
      %122 = arith.subi %c1_i32_85, %0 : i32
      %c128_i32_86 = arith.constant 128 : i32
      %123 = arith.muli %121, %c128_i32_86 : i32
      %124 = tpu.assume_multiple %123, 128 : i32
      %c0_i32_87 = arith.constant 0 : i32
      %125 = tpu.memref_slice %arg2[%arg0, %c0_i32_87, %124] : memref<2x8x256xf32, #tpu.memory_space<any>> -> memref<1x8x256xf32, #tpu.memory_space<any>>
      %126 = tpu.memref_squeeze %125 : memref<1x8x256xf32, #tpu.memory_space<any>> -> memref<8x256xf32, #tpu.memory_space<any>>
      %c0_i32_88 = arith.constant 0 : i32
      %c0_i32_89 = arith.constant 0 : i32
      %127 = tpu.memref_slice %arg14[%122, %c0_i32_88, %c0_i32_89] : memref<2x8x256xf32, #tpu.memory_space<vmem>> -> memref<1x8x256xf32, #tpu.memory_space<vmem>>
      %128 = tpu.memref_squeeze %127 : memref<1x8x256xf32, #tpu.memory_space<vmem>> -> memref<8x256xf32, #tpu.memory_space<vmem>>
      %129 = tpu.memref_slice %arg15[%122] : memref<2x!tpu.dma_semaphore, #tpu.memory_space<semaphore_mem>> -> memref<1x!tpu.dma_semaphore, #tpu.memory_space<semaphore_mem>>
      %130 = tpu.memref_squeeze %129 : memref<1x!tpu.dma_semaphore, #tpu.memory_space<semaphore_mem>> -> memref<!tpu.dma_semaphore, #tpu.memory_space<semaphore_mem>>
      tpu.enqueue_dma source(%126 : memref<8x256xf32, #tpu.memory_space<any>>) target(%128 : memref<8x256xf32, #tpu.memory_space<vmem>>) target_semaphore(%130 : memref<!tpu.dma_semaphore, #tpu.memory_space<semaphore_mem>>)
    } else {
    }
    %14 = arith.index_cast %0 : i32 to index
    %c0 = arith.constant 0 : index
    %c0_7 = arith.constant 0 : index
    %15 = vector.load %arg14[%14, %c0, %c0_7] : memref<2x8x256xf32, #tpu.memory_space<vmem>>, vector<1x8x256xf32>
    %16 = vector.shape_cast %15 : vector<1x8x256xf32> to vector<8x256xf32>
    %c128_i32 = arith.constant 128 : i32
    %17 = arith.muli %arg1, %c128_i32 : i32
    %c128_i32_8 = arith.constant 128 : i32
    %18 = arith.subi %17, %c128_i32_8 : i32
    %19 = tpu.iota {dimensions = array<i32: 1>} : vector<1x256xi32>
    %20 = vector.broadcast %18 : i32 to vector<1x256xi32>
    %21 = arith.addi %20, %19 : vector<1x256xi32>
    %c0_i32_9 = arith.constant 0 : i32
    %22 = vector.broadcast %c0_i32_9 : i32 to vector<1x256xi32>
    %23 = arith.cmpi sge, %21, %22 : vector<1x256xi32>
    %24 = arith.extui %23 : vector<1x256xi1> to vector<1x256xi32>
    %25 = arith.sitofp %24 : vector<1x256xi32> to vector<1x256xf32>
    %c2_i32_10 = arith.constant 2 : i32
    %26 = tpu.dynamic_rotate %16 by %c2_i32_10 dim 1 : vector<8x256xf32>, i32 -> vector<8x256xf32>
    %c0_11 = arith.constant 0 : index
    %c0_12 = arith.constant 0 : index
    %c0_13 = arith.constant 0 : index
    %27 = vector.load %arg3[%c0_11, %c0_12, %c0_13] : memref<3x8x8xf32, #tpu.memory_space<vmem>>, vector<1x8x8xf32>
    %28 = vector.shape_cast %27 : vector<1x8x8xf32> to vector<8x8xf32>
    %cst = arith.constant dense<0.000000e+00> : vector<8x256xf32>
    %29 = tpu.matmul %28, %26, %cst {dimension_numbers = #tpu.dot_dimension_numbers<[1], [0], [0], [1], [0, 0, 1, 1], [], []>} : vector<8x8xf32>, vector<8x256xf32>, vector<8x256xf32> -> vector<8x256xf32>
    %c1_i32_14 = arith.constant 1 : i32
    %30 = tpu.dynamic_rotate %16 by %c1_i32_14 dim 1 : vector<8x256xf32>, i32 -> vector<8x256xf32>
    %c1 = arith.constant 1 : index
    %c0_15 = arith.constant 0 : index
    %c0_16 = arith.constant 0 : index
    %31 = vector.load %arg3[%c1, %c0_15, %c0_16] : memref<3x8x8xf32, #tpu.memory_space<vmem>>, vector<1x8x8xf32>
    %32 = vector.shape_cast %31 : vector<1x8x8xf32> to vector<8x8xf32>
    %cst_17 = arith.constant dense<0.000000e+00> : vector<8x256xf32>
    %33 = tpu.matmul %32, %30, %cst_17 {dimension_numbers = #tpu.dot_dimension_numbers<[1], [0], [0], [1], [0, 0, 1, 1], [], []>} : vector<8x8xf32>, vector<8x256xf32>, vector<8x256xf32> -> vector<8x256xf32>
    %34 = arith.addf %29, %33 : vector<8x256xf32>
    %c2 = arith.constant 2 : index
    %c0_18 = arith.constant 0 : index
    %c0_19 = arith.constant 0 : index
    %35 = vector.load %arg3[%c2, %c0_18, %c0_19] : memref<3x8x8xf32, #tpu.memory_space<vmem>>, vector<1x8x8xf32>
    %36 = vector.shape_cast %35 : vector<1x8x8xf32> to vector<8x8xf32>
    %cst_20 = arith.constant dense<0.000000e+00> : vector<8x256xf32>
    %37 = tpu.matmul %36, %16, %cst_20 {dimension_numbers = #tpu.dot_dimension_numbers<[1], [0], [0], [1], [0, 0, 1, 1], [], []>} : vector<8x8xf32>, vector<8x256xf32>, vector<8x256xf32> -> vector<8x256xf32>
    %38 = arith.addf %34, %37 : vector<8x256xf32>
    %c0_21 = arith.constant 0 : index
    %c0_22 = arith.constant 0 : index
    %39 = vector.load %arg4[%c0_21, %c0_22] : memref<8x1xf32, #tpu.memory_space<vmem>>, vector<8x1xf32>
    %40 = vector.broadcast %39 : vector<8x1xf32> to vector<8x256xf32>
    %41 = arith.addf %38, %40 : vector<8x256xf32>
    %cst_23 = arith.constant 0.000000e+00 : f32
    %42 = vector.broadcast %cst_23 : f32 to vector<8x256xf32>
    %43 = arith.maximumf %41, %42 : vector<8x256xf32>
    %44 = vector.broadcast %25 : vector<1x256xf32> to vector<8x256xf32>
    %45 = arith.mulf %43, %44 : vector<8x256xf32>
    %c2_i32_24 = arith.constant 2 : i32
    %46 = tpu.dynamic_rotate %45 by %c2_i32_24 dim 1 : vector<8x256xf32>, i32 -> vector<8x256xf32>
    %c0_25 = arith.constant 0 : index
    %c0_26 = arith.constant 0 : index
    %c0_27 = arith.constant 0 : index
    %47 = vector.load %arg5[%c0_25, %c0_26, %c0_27] : memref<3x8x8xf32, #tpu.memory_space<vmem>>, vector<1x8x8xf32>
    %48 = vector.shape_cast %47 : vector<1x8x8xf32> to vector<8x8xf32>
    %cst_28 = arith.constant dense<0.000000e+00> : vector<8x256xf32>
    %49 = tpu.matmul %48, %46, %cst_28 {dimension_numbers = #tpu.dot_dimension_numbers<[1], [0], [0], [1], [0, 0, 1, 1], [], []>} : vector<8x8xf32>, vector<8x256xf32>, vector<8x256xf32> -> vector<8x256xf32>
    %c1_i32_29 = arith.constant 1 : i32
    %50 = tpu.dynamic_rotate %45 by %c1_i32_29 dim 1 : vector<8x256xf32>, i32 -> vector<8x256xf32>
    %c1_30 = arith.constant 1 : index
    %c0_31 = arith.constant 0 : index
    %c0_32 = arith.constant 0 : index
    %51 = vector.load %arg5[%c1_30, %c0_31, %c0_32] : memref<3x8x8xf32, #tpu.memory_space<vmem>>, vector<1x8x8xf32>
    %52 = vector.shape_cast %51 : vector<1x8x8xf32> to vector<8x8xf32>
    %cst_33 = arith.constant dense<0.000000e+00> : vector<8x256xf32>
    %53 = tpu.matmul %52, %50, %cst_33 {dimension_numbers = #tpu.dot_dimension_numbers<[1], [0], [0], [1], [0, 0, 1, 1], [], []>} : vector<8x8xf32>, vector<8x256xf32>, vector<8x256xf32> -> vector<8x256xf32>
    %54 = arith.addf %49, %53 : vector<8x256xf32>
    %c2_34 = arith.constant 2 : index
    %c0_35 = arith.constant 0 : index
    %c0_36 = arith.constant 0 : index
    %55 = vector.load %arg5[%c2_34, %c0_35, %c0_36] : memref<3x8x8xf32, #tpu.memory_space<vmem>>, vector<1x8x8xf32>
    %56 = vector.shape_cast %55 : vector<1x8x8xf32> to vector<8x8xf32>
    %cst_37 = arith.constant dense<0.000000e+00> : vector<8x256xf32>
    %57 = tpu.matmul %56, %45, %cst_37 {dimension_numbers = #tpu.dot_dimension_numbers<[1], [0], [0], [1], [0, 0, 1, 1], [], []>} : vector<8x8xf32>, vector<8x256xf32>, vector<8x256xf32> -> vector<8x256xf32>
    %58 = arith.addf %54, %57 : vector<8x256xf32>
    %c0_38 = arith.constant 0 : index
    %c0_39 = arith.constant 0 : index
    %59 = vector.load %arg6[%c0_38, %c0_39] : memref<8x1xf32, #tpu.memory_space<vmem>>, vector<8x1xf32>
    %60 = vector.broadcast %59 : vector<8x1xf32> to vector<8x256xf32>
    %61 = arith.addf %58, %60 : vector<8x256xf32>
    %cst_40 = arith.constant 0.000000e+00 : f32
    %62 = vector.broadcast %cst_40 : f32 to vector<8x256xf32>
    %63 = arith.maximumf %61, %62 : vector<8x256xf32>
    %c0_41 = arith.constant 0 : index
    %c0_42 = arith.constant 0 : index
    %64 = vector.load %arg7[%c0_41, %c0_42] : memref<8x8xf32, #tpu.memory_space<vmem>>, vector<8x8xf32>
    %cst_43 = arith.constant dense<0.000000e+00> : vector<8x256xf32>
    %65 = tpu.matmul %64, %16, %cst_43 {dimension_numbers = #tpu.dot_dimension_numbers<[1], [0], [0], [1], [0, 0, 1, 1], [], []>} : vector<8x8xf32>, vector<8x256xf32>, vector<8x256xf32> -> vector<8x256xf32>
    %c0_44 = arith.constant 0 : index
    %c0_45 = arith.constant 0 : index
    %66 = vector.load %arg8[%c0_44, %c0_45] : memref<8x1xf32, #tpu.memory_space<vmem>>, vector<8x1xf32>
    %67 = vector.broadcast %66 : vector<8x1xf32> to vector<8x256xf32>
    %68 = arith.addf %65, %67 : vector<8x256xf32>
    %69 = arith.addf %63, %68 : vector<8x256xf32>
    %cst_46 = arith.constant 0.000000e+00 : f32
    %70 = vector.broadcast %cst_46 : f32 to vector<8x256xf32>
    %71 = arith.maximumf %69, %70 : vector<8x256xf32>
    %72 = vector.broadcast %25 : vector<1x256xf32> to vector<8x256xf32>
    %73 = arith.mulf %71, %72 : vector<8x256xf32>
    %c4_i32 = arith.constant 4 : i32
    %74 = tpu.dynamic_rotate %73 by %c4_i32 dim 1 : vector<8x256xf32>, i32 -> vector<8x256xf32>
    %c0_47 = arith.constant 0 : index
    %c0_48 = arith.constant 0 : index
    %c0_49 = arith.constant 0 : index
    %75 = vector.load %arg9[%c0_47, %c0_48, %c0_49] : memref<3x8x8xf32, #tpu.memory_space<vmem>>, vector<1x8x8xf32>
    %76 = vector.shape_cast %75 : vector<1x8x8xf32> to vector<8x8xf32>
    %cst_50 = arith.constant dense<0.000000e+00> : vector<8x256xf32>
    %77 = tpu.matmul %76, %74, %cst_50 {dimension_numbers = #tpu.dot_dimension_numbers<[1], [0], [0], [1], [0, 0, 1, 1], [], []>} : vector<8x8xf32>, vector<8x256xf32>, vector<8x256xf32> -> vector<8x256xf32>
    %c2_i32_51 = arith.constant 2 : i32
    %78 = tpu.dynamic_rotate %73 by %c2_i32_51 dim 1 : vector<8x256xf32>, i32 -> vector<8x256xf32>
    %c1_52 = arith.constant 1 : index
    %c0_53 = arith.constant 0 : index
    %c0_54 = arith.constant 0 : index
    %79 = vector.load %arg9[%c1_52, %c0_53, %c0_54] : memref<3x8x8xf32, #tpu.memory_space<vmem>>, vector<1x8x8xf32>
    %80 = vector.shape_cast %79 : vector<1x8x8xf32> to vector<8x8xf32>
    %cst_55 = arith.constant dense<0.000000e+00> : vector<8x256xf32>
    %81 = tpu.matmul %80, %78, %cst_55 {dimension_numbers = #tpu.dot_dimension_numbers<[1], [0], [0], [1], [0, 0, 1, 1], [], []>} : vector<8x8xf32>, vector<8x256xf32>, vector<8x256xf32> -> vector<8x256xf32>
    %82 = arith.addf %77, %81 : vector<8x256xf32>
    %c2_56 = arith.constant 2 : index
    %c0_57 = arith.constant 0 : index
    %c0_58 = arith.constant 0 : index
    %83 = vector.load %arg9[%c2_56, %c0_57, %c0_58] : memref<3x8x8xf32, #tpu.memory_space<vmem>>, vector<1x8x8xf32>
    %84 = vector.shape_cast %83 : vector<1x8x8xf32> to vector<8x8xf32>
    %cst_59 = arith.constant dense<0.000000e+00> : vector<8x256xf32>
    %85 = tpu.matmul %84, %73, %cst_59 {dimension_numbers = #tpu.dot_dimension_numbers<[1], [0], [0], [1], [0, 0, 1, 1], [], []>} : vector<8x8xf32>, vector<8x256xf32>, vector<8x256xf32> -> vector<8x256xf32>
    %86 = arith.addf %82, %85 : vector<8x256xf32>
    %c0_60 = arith.constant 0 : index
    %c0_61 = arith.constant 0 : index
    %87 = vector.load %arg10[%c0_60, %c0_61] : memref<8x1xf32, #tpu.memory_space<vmem>>, vector<8x1xf32>
    %88 = vector.broadcast %87 : vector<8x1xf32> to vector<8x256xf32>
    %89 = arith.addf %86, %88 : vector<8x256xf32>
    %cst_62 = arith.constant 0.000000e+00 : f32
    %90 = vector.broadcast %cst_62 : f32 to vector<8x256xf32>
    %91 = arith.maximumf %89, %90 : vector<8x256xf32>
    %92 = vector.broadcast %25 : vector<1x256xf32> to vector<8x256xf32>
    %93 = arith.mulf %91, %92 : vector<8x256xf32>
    %c4_i32_63 = arith.constant 4 : i32
    %94 = tpu.dynamic_rotate %93 by %c4_i32_63 dim 1 : vector<8x256xf32>, i32 -> vector<8x256xf32>
    %c0_64 = arith.constant 0 : index
    %c0_65 = arith.constant 0 : index
    %c0_66 = arith.constant 0 : index
    %95 = vector.load %arg11[%c0_64, %c0_65, %c0_66] : memref<3x8x8xf32, #tpu.memory_space<vmem>>, vector<1x8x8xf32>
    %96 = vector.shape_cast %95 : vector<1x8x8xf32> to vector<8x8xf32>
    %cst_67 = arith.constant dense<0.000000e+00> : vector<8x256xf32>
    %97 = tpu.matmul %96, %94, %cst_67 {dimension_numbers = #tpu.dot_dimension_numbers<[1], [0], [0], [1], [0, 0, 1, 1], [], []>} : vector<8x8xf32>, vector<8x256xf32>, vector<8x256xf32> -> vector<8x256xf32>
    %c2_i32_68 = arith.constant 2 : i32
    %98 = tpu.dynamic_rotate %93 by %c2_i32_68 dim 1 : vector<8x256xf32>, i32 -> vector<8x256xf32>
    %c1_69 = arith.constant 1 : index
    %c0_70 = arith.constant 0 : index
    %c0_71 = arith.constant 0 : index
    %99 = vector.load %arg11[%c1_69, %c0_70, %c0_71] : memref<3x8x8xf32, #tpu.memory_space<vmem>>, vector<1x8x8xf32>
    %100 = vector.shape_cast %99 : vector<1x8x8xf32> to vector<8x8xf32>
    %cst_72 = arith.constant dense<0.000000e+00> : vector<8x256xf32>
    %101 = tpu.matmul %100, %98, %cst_72 {dimension_numbers = #tpu.dot_dimension_numbers<[1], [0], [0], [1], [0, 0, 1, 1], [], []>} : vector<8x8xf32>, vector<8x256xf32>, vector<8x256xf32> -> vector<8x256xf32>
    %102 = arith.addf %97, %101 : vector<8x256xf32>
    %c2_73 = arith.constant 2 : index
    %c0_74 = arith.constant 0 : index
    %c0_75 = arith.constant 0 : index
    %103 = vector.load %arg11[%c2_73, %c0_74, %c0_75] : memref<3x8x8xf32, #tpu.memory_space<vmem>>, vector<1x8x8xf32>
    %104 = vector.shape_cast %103 : vector<1x8x8xf32> to vector<8x8xf32>
    %cst_76 = arith.constant dense<0.000000e+00> : vector<8x256xf32>
    %105 = tpu.matmul %104, %93, %cst_76 {dimension_numbers = #tpu.dot_dimension_numbers<[1], [0], [0], [1], [0, 0, 1, 1], [], []>} : vector<8x8xf32>, vector<8x256xf32>, vector<8x256xf32> -> vector<8x256xf32>
    %106 = arith.addf %102, %105 : vector<8x256xf32>
    %c0_77 = arith.constant 0 : index
    %c0_78 = arith.constant 0 : index
    %107 = vector.load %arg12[%c0_77, %c0_78] : memref<8x1xf32, #tpu.memory_space<vmem>>, vector<8x1xf32>
    %108 = vector.broadcast %107 : vector<8x1xf32> to vector<8x256xf32>
    %109 = arith.addf %106, %108 : vector<8x256xf32>
    %cst_79 = arith.constant 0.000000e+00 : f32
    %110 = vector.broadcast %cst_79 : f32 to vector<8x256xf32>
    %111 = arith.maximumf %109, %110 : vector<8x256xf32>
    %112 = arith.addf %111, %73 : vector<8x256xf32>
    %cst_80 = arith.constant 0.000000e+00 : f32
    %113 = vector.broadcast %cst_80 : f32 to vector<8x256xf32>
    %114 = arith.maximumf %112, %113 : vector<8x256xf32>
    %115 = vector.broadcast %25 : vector<1x256xf32> to vector<8x256xf32>
    %116 = arith.mulf %114, %115 : vector<8x256xf32>
    %117 = vector.extract_strided_slice %116 {offsets = [0, 128], sizes = [8, 128], strides = [1, 1]} : vector<8x256xf32> to vector<8x128xf32>
    %c0_81 = arith.constant 0 : index
    %c0_82 = arith.constant 0 : index
    %c0_83 = arith.constant 0 : index
    %118 = vector.load %arg13[%c0_81, %c0_82, %c0_83] : memref<1x8x128xf32, #tpu.memory_space<vmem>>, vector<1x8x128xf32>
    %119 = vector.shape_cast %118 : vector<1x8x128xf32> to vector<8x128xf32>
    %120 = vector.shape_cast %117 : vector<8x128xf32> to vector<1x8x128xf32>
    tpu.vector_store %arg13[%c0_81, %c0_82, %c0_83], %120 {strides = array<i32>} : memref<1x8x128xf32, #tpu.memory_space<vmem>>, vector<1x8x128xf32>,
    return
  }
  func.func @transform_1(%arg0: i32, %arg1: i32) -> (i32, i32, i32) {
    %c0_i32 = arith.constant 0 : i32
    %c0_i32_0 = arith.constant 0 : i32
    %c0_i32_1 = arith.constant 0 : i32
    %c0_i32_2 = arith.constant 0 : i32
    return %c0_i32, %c0_i32_0, %c0_i32_1 : i32, i32, i32
  }
  func.func @transform_2(%arg0: i32, %arg1: i32) -> (i32, i32) {
    %c0_i32 = arith.constant 0 : i32
    %c0_i32_0 = arith.constant 0 : i32
    %c0_i32_1 = arith.constant 0 : i32
    return %c0_i32, %c0_i32_0 : i32, i32
  }
  func.func @transform_3(%arg0: i32, %arg1: i32) -> (i32, i32, i32) {
    %c0_i32 = arith.constant 0 : i32
    %c0_i32_0 = arith.constant 0 : i32
    %c0_i32_1 = arith.constant 0 : i32
    %c0_i32_2 = arith.constant 0 : i32
    return %c0_i32, %c0_i32_0, %c0_i32_1 : i32, i32, i32
  }
  func.func @transform_4(%arg0: i32, %arg1: i32) -> (i32, i32) {
    %c0_i32 = arith.constant 0 : i32
    %c0_i32_0 = arith.constant 0 : i32
    %c0_i32_1 = arith.constant 0 : i32
    return %c0_i32, %c0_i32_0 : i32, i32
  }
  func.func @transform_5(%arg0: i32, %arg1: i32) -> (i32, i32) {
    %c0_i32 = arith.constant 0 : i32
    %c0_i32_0 = arith.constant 0 : i32
    %c0_i32_1 = arith.constant 0 : i32
    return %c0_i32, %c0_i32_0 : i32, i32
  }
  func.func @transform_6(%arg0: i32, %arg1: i32) -> (i32, i32) {
    %c0_i32 = arith.constant 0 : i32
    %c0_i32_0 = arith.constant 0 : i32
    %c0_i32_1 = arith.constant 0 : i32
    return %c0_i32, %c0_i32_0 : i32, i32
  }
  func.func @transform_7(%arg0: i32, %arg1: i32) -> (i32, i32, i32) {
    %c0_i32 = arith.constant 0 : i32
    %c0_i32_0 = arith.constant 0 : i32
    %c0_i32_1 = arith.constant 0 : i32
    %c0_i32_2 = arith.constant 0 : i32
    return %c0_i32, %c0_i32_0, %c0_i32_1 : i32, i32, i32
  }
  func.func @transform_8(%arg0: i32, %arg1: i32) -> (i32, i32) {
    %c0_i32 = arith.constant 0 : i32
    %c0_i32_0 = arith.constant 0 : i32
    %c0_i32_1 = arith.constant 0 : i32
    return %c0_i32, %c0_i32_0 : i32, i32
  }
  func.func @transform_9(%arg0: i32, %arg1: i32) -> (i32, i32, i32) {
    %c0_i32 = arith.constant 0 : i32
    %c0_i32_0 = arith.constant 0 : i32
    %c0_i32_1 = arith.constant 0 : i32
    %c0_i32_2 = arith.constant 0 : i32
    return %c0_i32, %c0_i32_0, %c0_i32_1 : i32, i32, i32
  }
  func.func @transform_10(%arg0: i32, %arg1: i32) -> (i32, i32) {
    %c0_i32 = arith.constant 0 : i32
    %c0_i32_0 = arith.constant 0 : i32
    %c0_i32_1 = arith.constant 0 : i32
    return %c0_i32, %c0_i32_0 : i32, i32
  }
  func.func @transform_11(%arg0: i32, %arg1: i32) -> (i32, i32, i32) {
    %c0_i32 = arith.constant 0 : i32
    %c0_i32_0 = arith.constant 0 : i32
    return %arg0, %c0_i32, %arg1 : i32, i32, i32
  }
}

</mosaic_0001>

<bundles_post_ra>
// kernel: tpu_custom_call.1
= control target key start
LH: loop header
LB: loop body
LE: loop exit
PB: predicated region body
PF: predicated region fallthrough
CT: control target
= control target key end

     0   :  { %s2533_s0 = inlined_call_operand.vmem [shape: f32[2,8,256], index: 0, kind: input, shape index: {}]   ;;  %s2534_s1 = inlined_call_operand.hbm [shape: f32[3,8,8], index: 1, kind: input, shape index: {}]   ;;  %s2535_s2 = inlined_call_operand.vmem [shape: f32[8,1], index: 2, kind: input, shape index: {}]   ;;  %s2536_s3 = inlined_call_operand.hbm [shape: f32[3,8,8], index: 3, kind: input, shape index: {}]   ;;  %s2537_s4 = inlined_call_operand.vmem [shape: f32[8,1], index: 4, kind: input, shape index: {}]   ;;  %s2538_s5 = inlined_call_operand.hbm [shape: f32[8,8], index: 5, kind: input, shape index: {}]   ;;  %s2539_s6 = inlined_call_operand.vmem [shape: f32[8,1], index: 6, kind: input, shape index: {}]   ;;  %s2540_s7 = inlined_call_operand.vmem [shape: f32[3,8,8], index: 7, kind: input, shape index: {}]   ;;  %s2541_s8 = inlined_call_operand.vmem [shape: f32[8,1], index: 8, kind: input, shape index: {}]   ;;  %s2542_s9 = inlined_call_operand.hbm [shape: f32[3,8,8], index: 9, kind: input, shape index: {}]   ;;  %s2543_s10 = inlined_call_operand.vmem [shape: f32[8,1], index: 10, kind: input, shape index: {}]   ;;  %s2544_s11 = inlined_call_operand.hbm [shape: f32[2,8,128], index: 11, kind: output, shape index: {}]  }
   0x1   :  { %2551 = sst [smem:[#allocation24_spill]] %s2536_s3 }
   0x2   :  { %16 = vsyncpa [#allocation5], 0 }
   0x3   :  { %17 = vsyncpa [#allocation8], 0 }
   0x4   :  { %18 = vsyncpa [#allocation11], 0 }
   0x5   :  { %19 = vsyncpa [#allocation6], 0 }
   0x6   :  { %21 = vsyncpa [#allocation6 + $0x1], 0  ;;  %s2230_s17 = smov 0   ;;  %s2232_s18 = smov 0  }
   0x7   :  { %s2234_s19 = smov 0   ;;  %s2236_s20 = smov 0  }
   0x8   :  { %s2238_s21 = smov 0   ;;  %s2240_s22 = smov 0  }
   0x9 LB: > { %2552 = sst [smem:[#allocation20_spill]] %s2144_s19  ;;  %s1813_s23 = sadd.s32 4294967295, %s2156_s22   ;;  %s2156_s22 = sphi %s2240_s22, %s27_s22   ;;  %s2152_s21 = sphi %s2238_s21, %s2568_s21   ;;  %s2148_s20 = sphi %s2236_s20, %s2567_s20   ;;  %s2144_s19 = sphi %s2234_s19, %s2566_s19   ;;  %s2140_s18 = sphi %s2232_s18, %s2570_s18   ;;  %s2136_s17 = sphi %s2230_s17, %s2569_s17  }
   0xa   : > { %2553 = sst [smem:[#allocation21_spill]] %s2152_s21  ;;  %s1814_s24 = sadd.s32 4294967294, %s2156_s22  }
   0xb   : > { %s39_s25 = sadd.s32 1, %s2152_s21  ;;  %s258_s26 = sadd.s32 1, %s2144_s19 }
   0xc   : > { %p41_p0 = scmp.ge.s32.totalorder %s39_s25, 2  ;;  %p268_p1 = scmp.ne.s32.totalorder %s2144_s19, %s2140_s18 }
   0xd   : > { %p269_p2 = scmp.eq.s32.totalorder %s1813_s23, 1  ;;  %p274_p3 = scmp.ne.s32.totalorder %s2140_s18, %s2136_s17 }
   0xe   : > { %s2572_s25 = smov (%p41_p0, %s39_s25), 0  ;;  %p275_p5 = scmp.eq.s32.totalorder %s1814_s24, 1 }
   0xf   : > { %2554 = sst [smem:[#allocation22_spill]] %s2572_s25  ;;  %p2270_p4 = por %p269_p2, %p268_p1 }
  0x10   : > { %s253_s28 = ssub.s32 %s2152_s21, %s2572_s25  ;;  %p1815_p6 = scmp.ge.s32.totalorder %s2156_s22, 1 }
  0x11   : > { %s2555_s27 = scalar_select %p2270_p4, 1, 0 }
  0x12   : > { %p256_p7 = scmp.eq.s32.totalorder %s253_s28, 0  ;;  %p2277_p8 = por %p275_p5, %p274_p3 }
  0x13   : > { %p282_p9 = scmp.lt.s32.totalorder %s2156_s22, 3  ;;  %p2289_p11 = scmp.eq.s32.totalorder %s1813_s23, 0 }
  0x14   : > { %s2556_s29 = scalar_select %p2277_p8, 1, 0 }
  0x15   : > { %s2283_s30 = scalar_select %p256_p7, %s2144_s19, %s258_s26  }
  0x16   : > { %p2285_p10 = pnand %p1815_p6, %p282_p9  ;;  %s2158_s14 = smov [#allocation7]  }
  0x17   : > { %2557 = sst [smem:[#allocation23_spill]] %s2283_s30  ;;  %s310_s15 = sshll.u32 %s2158_s14, 4  ;;  %s311_s15 = int_to_ptr.vmem [resolvable:$true] %s310_s15 }
  0x18   : > { %s2559_s13 = scalar_select %p2289_p11, 1, 0 }
  0x19   : > { %p1875_p12 = pneg %p2285_p10  ;;  %s2159_s24 = smov [#allocation4]  }
  0x1a   : > { %s294_s26 = sshll.u32 %s2159_s24, 4  ;;  %s1973_s23 = scalar_lea.vmem %s311_s15, 384  ;;  %s295_s26 = int_to_ptr.vmem [resolvable:$true] %s294_s26 }
  0x1b   : > { %p2297_p13 = pnand %p2289_p11, %p1875_p12  ;;  %p1974_p1 = scmp.ne.s32.totalorder %s311_s15, %s1973_s23 }
  0x1c   : > { %p1981_p5 = scmp.lt.s32.totalorder %s311_s15, %s311_s15  ;;  %p1982_p6 = scmp.lt.s32.totalorder %s1973_s23, %s1973_s23 }
  0x1d   : > { %p1964_p0 = pneg %p2297_p13 }
  0x1e   : > { %p1983_p7 = por %p1982_p6, %p1981_p5 }
  0x1f   : > { %p1976_p2 = pnand %p1974_p1, %p1964_p0 }
  0x21   : > { %p1977_p3 = pneg %p1976_p2 }
  0x23   : > { %p1984_p9 = pnand %p1983_p7, %p1977_p3 }
  0x25   : > { %1987 = shalt.err (!%p1984_p9)
}
  0x26   : > { %s2160_s28 = smov 128   ;;  %s2161_s14 = smov 8  }
  0x27   : > { %s2561_s3 = sld [smem:[#allocation24_spill]]  ;;  %s1999_s21 = scalar_lea.vmem %s295_s26, 384 }
  0x28   : > { %p2000_p12 = scmp.ne.s32.totalorder %s295_s26, %s1999_s21  ;;  %p2007_p3 = scmp.lt.s32.totalorder %s295_s26, %s295_s26 }
  0x29   : > { %p2008_p5 = scmp.lt.s32.totalorder %s1999_s21, %s1999_s21 }
  0x2a   : > { %p2002_p1 = pnand %p2000_p12, %p1964_p0 }
  0x2b   : > { %p2009_p6 = por %p2008_p5, %p2007_p3 }
  0x2c   : > { %p2003_p2 = pneg %p2002_p1 }
  0x2d   : > { %1881 = dma.hbm_to_vmem [thread:$0]  (!%p2297_p13), %s2561_s3, 384, %s311_s15, [#allocation8], %s2160_s28, %s2160_s28, %s2161_s14  }
  0x2e   : > { %p2010_p7 = pnand %p2009_p6, %p2003_p2 }
  0x30   : > { %2013 = shalt.err (!%p2010_p7)
}
  0x31   : > { %1878 = dma.hbm_to_vmem [thread:$0]  (!%p2297_p13), %s2534_s1, 384, %s295_s26, [#allocation5], %s2160_s28, %s2160_s28, %s2161_s14  }
  0x32   : > { %s2162_s15 = smov [#allocation9]   ;;  %s2163_s3 = smov [#allocation10]  }
  0x33   : > { %s327_s24 = sshll.u32 %s2162_s15, 4  ;;  %s346_s30 = sshll.u32 %s2163_s3, 4  ;;  %s328_s24 = int_to_ptr.vmem [resolvable:$true] %s327_s24  ;;  %s347_s30 = int_to_ptr.vmem [resolvable:$true] %s346_s30 }
  0x34   : > { %s2025_s19 = scalar_lea.vmem %s328_s24, 128  ;;  %p2033_p2 = scmp.lt.s32.totalorder %s328_s24, %s328_s24 }
  0x35   : > { %p2026_p9 = scmp.ne.s32.totalorder %s328_s24, %s2025_s19  ;;  %p2034_p3 = scmp.lt.s32.totalorder %s2025_s19, %s2025_s19 }
  0x37   : > { %p2028_p12 = pnand %p2026_p9, %p1964_p0  ;;  %p2035_p5 = por %p2034_p3, %p2033_p2 }
  0x39   : > { %p2029_p1 = pneg %p2028_p12 }
  0x3b   : > { %p2036_p6 = pnand %p2035_p5, %p2029_p1 }
  0x3d   : > { %2039 = shalt.err (!%p2036_p6)
}
  0x3e   : > { %1884 = dma.hbm_to_vmem [thread:$0]  (!%p2297_p13), %s2538_s5, 128, %s328_s24, [#allocation8]  }
  0x3f   : > { %s2051_s3 = scalar_lea.vmem %s347_s30, 384  ;;  %p2059_p12 = scmp.lt.s32.totalorder %s347_s30, %s347_s30 }
  0x40   : > { %p2052_p7 = scmp.ne.s32.totalorder %s347_s30, %s2051_s3  ;;  %p2060_p4 = scmp.lt.s32.totalorder %s2051_s3, %s2051_s3 }
  0x42   : > { %p2054_p8 = pnand %p2052_p7, %p1964_p0  ;;  %p2061_p11 = por %p2060_p4, %p2059_p12 }
  0x44   : > { %p2055_p9 = pneg %p2054_p8 }
  0x46   : > { %p2062_p2 = pnand %p2061_p11, %p2055_p9 }
  0x48   : > { %2065 = shalt.err (!%p2062_p2)
}
  0x49   : > { %1887 = dma.hbm_to_vmem [thread:$0]  (!%p2297_p13), %s2542_s9, 384, %s347_s30, [#allocation11], %s2160_s28, %s2160_s28, %s2161_s14  }
  0x4a   : > { %365 = sbr.rel (%p2285_p10) target bundleno = 1417 (0x589), region = 60  ;;  %p2562_p0 = scmp.ne.s32.totalorder (!%p2285_p10), %s2559_s13, 0 }
  0x4f   : > { %2117 = dma.done.wait (%p2562_p0), [#allocation5], 384  }
  0x50   : > { %2119 = vsyncadd (%p2562_p0), [#allocation5], 4294966912 }
  0x51   : > { %2121 = dma.done.wait (%p2562_p0), [#allocation8], 512  }
  0x52   : > { %2123 = vsyncadd (%p2562_p0), [#allocation8], 4294966784 }
  0x53   : > { %2125 = dma.done.wait (%p2562_p0), [#allocation11], 384  }
  0x54   : > { %2127 = vsyncadd (%p2562_p0), [#allocation11], 4294966912  ;;  %s407_s30 = sand.u32 1, %s2140_s18   ;;  %s1854_s12 = sshll.u32 %s2148_s20, 4 }
  0x55   : > { %s2362_s16 = sshll.u32 %s407_s30, 3  ;;  %s423_s25 = scalar_lea.vmem %s2533_s0, %s1854_s12 }
  0x56   : > { %v2367_v0 = vld [vmem:[%s423_s25] sm:$0xff]  ;;  %v2369_v1 = vld [vmem:[%s423_s25 + $0x8] sm:$0xff]  ;;  %s409_s15 = scalar_lea.vmem [#allocation12], %s2362_s16 }
  0x57   : > { %472 = vsyncadd [#allocation3], 256 }
  0x58   : > { %2128 = dma.done.wait [#allocation3], 256 }
  0x59   : > { %2129 = vsyncadd [#allocation3], 4294967040  ;;  %s2164_s13 = smov 1   ;;  %s2165_s24 = smov 2   ;;  %v2166_v2 = vmov 0.0   ;;  %v2167_v3 = vmov 0   ;;  %v547_v5 = vlaneseq }
  0x5a   : > { %567 = vrot.lane.b32.xlu0 %v2367_v0, %s2164_s13  ;;  %559 = vrot.lane.b32.xlu1 %v2367_v0, %s2165_s24  ;;  %v803_v4 = vld [vmem:[%s2535_s2] sm:$0xff]  ;;  %vm576_vm2 = vcmask 64512   ;;  %v575_v15 = vld [vmem:[#allocation4 + $0x8] sm:$0xff]  ;;  %v726_v17 = vld [vmem:[#allocation4 + $0x10] sm:$0xff]  ;;  %s2168_s28 = smov 4   ;;  %s1657_s26 = scalar_lea.sflag [#allocation6], %s407_s30 }
  0x5b   : > { %644 = vmatprep.mubr.f32.mxu0 %v2166_v2  ;;  %718 = vmatprep.mubr.f32.mxu1 %v2166_v2  ;;  %v2385_v6 = vand.u32 127, %v547_v5  ;;  %v566_v16 = vld [vmem:[#allocation4] sm:$0xff]  ;;  %v821_v45 = vld [vmem:[#allocation7] sm:$0xff]  ;;  %v979_v46 = vld [vmem:[#allocation7 + $0x10] sm:$0xff]  ;;  %p2563_p8 = scmp.ne.s32.totalorder %s2555_s27, 0 }
  0x5c   : > { %1960 = vset.pattern.permute.xlu0 %v2167_v3  ;;  %1961 = vset.pattern.permute.xlu1 %v2167_v3  ;;  %v1056_v33 = vld [vmem:[%s2537_s4] sm:$0xff]  ;;  %v1066_v47 = vld [vmem:[#allocation9] sm:$0xff] }
  0x5d   : > { %vm563_vm0 = vcmp.lt.s32.totalorder %v2385_v6, 2  ;;  %vm571_vm1 = vcmp.lt.s32.totalorder %v2385_v6, 1  ;;  %v1067_v35 = vld [vmem:[%s2539_s6] sm:$0xff]  ;;  %vm1157_vm3 = vcmp.lt.s32.totalorder %v2385_v6, 4 }
  0x5e   : > { %569 = vrot.lane.b32.xlu0 %v2369_v1, %s2164_s13  ;;  %561 = vrot.lane.b32.xlu1 %v2369_v1, %s2165_s24  ;;  %v829_v40 = vld [vmem:[#allocation7 + $0x8] sm:$0xff] }
  0x62   : > { %806 = vperm.xlu0 %1960, %v803_v4  }
  0xcc   : > { %v568_v7 = vpop.permute.xlu0 %567  ;;  %v560_v8 = vpop.permute.xlu1 %559 }
  0xd0   : > { %v570_v9 = vpop.permute.xlu0 %569  ;;  %v562_v10 = vpop.permute.xlu1 %561 }
  0xd1   : > { %v572_v11 = vsel %vm571_vm1, %v568_v7, %v570_v9  ;;  %v564_v12 = vsel %vm563_vm0, %v560_v8, %v562_v10  ;;  %v573_v13 = vsel %vm571_vm1, %v570_v9, %v568_v7  ;;  %v565_v14 = vsel %vm563_vm0, %v562_v10, %v560_v8 }
  0xd2   : > { %610 = vmatprep.subr.mxu0 %v572_v11  ;;  %684 = vmatprep.subr.mxu1 %v564_v12  ;;  %v1395_v11 = vld [vmem:[%s2541_s8] sm:$0xff] }
  0xd3   : > { %611 = vmatpush1.msra.mxu0 %v573_v13  ;;  %685 = vmatpush1.msra.mxu1 %v565_v14 }
  0xd4   : > { %1833 = vmatmul.mubr.msk.f32.vlgmr.msra.gmra.mxu0 %vm576_vm2, %v575_v15  ;;  %1834 = vmatmul.mubr.msk.f32.vlgmr.msra.gmra.mxu1 %vm576_vm2, %v566_v16  ;;  %v1840_v16 = vld [vmem:[%s2540_s7 + $0x8] sm:$0xff] }
  0xd5   : > { %760 = vmatprep.subr.mxu0 %v2369_v1  ;;  %794 = vmatprep.mubr.f32.mxu0 %v2166_v2 }
  0xd6   : > { %761 = vmatpush1.msra.mxu0 %v2367_v0  ;;  %897 = vmatprep.mubr.f32.mxu1 %v2166_v2 }
  0xd8   : > { %1835 = vmatmul.mubr.msk.f32.vlgmr.msra.gmra.mxu0 %vm576_vm2, %v726_v17 }
  0xd9   : > { %971 = vmatprep.mubr.f32.mxu0 %v2166_v2 }
  0xdd   : > { %v807_v24 = vpop.permute.xlu0 %806 }
 0x194   : > { %v646_v18 = vpop.f32.mrf.mxu0  ;;  %v720_v19 = vpop.f32.mrf.mxu1 }
 0x195   : > { %v721_v22 = vadd.f32 %v720_v19, %v646_v18 }
 0x196   : > { %v648_v20 = vpop.f32.mrf.mxu0  ;;  %v722_v21 = vpop.f32.mrf.mxu1 }
 0x197   : > { %v723_v25 = vadd.f32 %v722_v21, %v648_v20  ;;  %v1160_v21 = vld [vmem:[%s2540_s7] sm:$0xff] }
 0x198   : > { %v796_v23 = vpop.f32.mrf.mxu0 }
 0x199   : > { %v801_v26 = vadd.f32 %v796_v23, %v721_v22  ;;  %v1843_v22 = vld [vmem:[%s2540_s7 + $0x10] sm:$0xff] }
 0x19a   : > { %v798_v27 = vpop.f32.mrf.mxu0 }
 0x19b   : > { %v809_v28 = vadd.f32 %v807_v24, %v801_v26  ;;  %v802_v29 = vadd.f32 %v798_v27, %v723_v25 }
 0x19d   : > { %v811_v30 = vmax.f32 %v809_v28, 0.0  ;;  %v810_v32 = vadd.f32 %v807_v24, %v802_v29 }
 0x19f   : > { %v813_v31 = vmul.f32 0.0, %v811_v30  ;;  %v812_v34 = vmax.f32 %v810_v32, 0.0 }
 0x1a1   : > { %815 = vrot.lane.b32.xlu0 %v813_v31, %s2165_s24  ;;  %822 = vrot.lane.b32.xlu1 %v813_v31, %s2164_s13 }
 0x1a5   : > { %1059 = vperm.xlu0 %1960, %v1056_v33   ;;  %824 = vrot.lane.b32.xlu1 %v812_v34, %s2164_s13 }
 0x1a9   : > { %817 = vrot.lane.b32.xlu1 %v812_v34, %s2165_s24 }
 0x1ad   : > { %1070 = vperm.xlu1 %1961, %v1067_v35  }
 0x213   : > { %v823_v36 = vpop.permute.xlu1 %822  ;;  %v816_v41 = vpop.permute.xlu0 %815 }
 0x217   : > { %v825_v37 = vpop.permute.xlu1 %824 }
 0x218   : > { %v827_v38 = vsel %vm571_vm1, %v825_v37, %v823_v36  ;;  %v826_v39 = vsel %vm571_vm1, %v823_v36, %v825_v37 }
 0x219   : > { %863 = vmatprep.subr.mxu1 %v826_v39  ;;  %v1644_v39 = vld [vmem:[%s2543_s10] sm:$0xff] }
 0x21a   : > { %864 = vmatpush1.msra.mxu1 %v827_v38 }
 0x21b   : > { %1836 = vmatmul.mubr.msk.f32.vlgmr.msra.gmra.mxu1 %vm576_vm2, %v829_v40  ;;  %1013 = vmatprep.subr.mxu1 %v812_v34  ;;  %v818_v42 = vpop.permute.xlu1 %817 }
 0x21c   : > { %v820_v43 = vsel %vm563_vm0, %v818_v42, %v816_v41  ;;  %1014 = vmatpush1.msra.mxu1 %v813_v31  ;;  %v819_v44 = vsel %vm563_vm0, %v816_v41, %v818_v42  ;;  %1047 = vmatprep.mubr.f32.mxu1 %v2166_v2 }
 0x21d   : > { %937 = vmatprep.subr.mxu0 %v819_v44  ;;  %v1421_v44 = vld [vmem:[#allocation10 + $0x8] sm:$0xff] }
 0x21e   : > { %938 = vmatpush1.msra.mxu0 %v820_v43 }
 0x21f   : > { %1837 = vmatmul.mubr.msk.f32.vlgmr.msra.gmra.mxu0 %vm576_vm2, %v821_v45  ;;  %1838 = vmatmul.mubr.msk.f32.vlgmr.msra.gmra.mxu1 %vm576_vm2, %v979_v46 }
 0x220   : > { %1106 = vmatprep.subr.mxu0 %v2369_v1  ;;  %1140 = vmatprep.mubr.f32.mxu0 %v2166_v2  ;;  %v1060_v55 = vpop.permute.xlu0 %1059 }
 0x221   : > { %1107 = vmatpush1.msra.mxu0 %v2367_v0  ;;  %1236 = vmatprep.mubr.f32.mxu1 %v2166_v2 }
 0x223   : > { %1839 = vmatmul.mubr.msk.f32.vlgmr.msra.gmra.mxu0 %vm576_vm2, %v1066_v47 }
 0x224   : > { %1310 = vmatprep.mubr.f32.mxu0 %v2166_v2 }
 0x228   : > { %v1071_v54 = vpop.permute.xlu1 %1070 }
 0x2db   : > { %v899_v48 = vpop.f32.mrf.mxu1 }
 0x2dd   : > { %v901_v49 = vpop.f32.mrf.mxu1 }
 0x2df   : > { %v973_v50 = vpop.f32.mrf.mxu0  ;;  %v1049_v51 = vpop.f32.mrf.mxu1 }
 0x2e0   : > { %v974_v52 = vadd.f32 %v973_v50, %v899_v48  ;;  %v1569_v50 = vld [vmem:[#allocation10 + $0x10] sm:$0xff] }
 0x2e1   : > { %v975_v53 = vpop.f32.mrf.mxu0  ;;  %v1051_v58 = vpop.f32.mrf.mxu1 }
 0x2e2   : > { %v1054_v56 = vadd.f32 %v1049_v51, %v974_v52  ;;  %v976_v57 = vadd.f32 %v975_v53, %v901_v49  ;;  %v1413_v49 = vld [vmem:[#allocation10] sm:$0xff] }
 0x2e3   : > { %v1142_v59 = vpop.f32.mrf.mxu0 }
 0x2e4   : > { %v1062_v60 = vadd.f32 %v1060_v55, %v1054_v56  ;;  %v1055_v61 = vadd.f32 %v1051_v58, %v976_v57  ;;  %v1143_v62 = vadd.f32 %v1142_v59, %v1071_v54 }
 0x2e5   : > { %v1144_v63 = vpop.f32.mrf.mxu0 }
 0x2e6   : > { %v1064_v0 = vmax.f32 %v1062_v60, 0.0  ;;  %v1063_v1 = vadd.f32 %v1060_v55, %v1055_v61  ;;  %v1145_v4 = vadd.f32 %v1144_v63, %v1071_v54 }
 0x2e8   : > { %v1065_v3 = vmax.f32 %v1063_v1, 0.0  ;;  %v1147_v5 = vadd.f32 %v1143_v62, %v1064_v0 }
 0x2ea   : > { %v1148_v7 = vadd.f32 %v1145_v4, %v1065_v3  ;;  %v1149_v8 = vmax.f32 %v1147_v5, 0.0 }
 0x2ec   : > { %v2433_v9 = vmax.f32 %v1148_v7, 0.0  ;;  %v1151_v10 = vmul.f32 0.0, %v1149_v8 }
 0x2ee   : > { %1163 = vrot.lane.b32.xlu1 %v2433_v9, %s2165_s24  ;;  %1161 = vrot.lane.b32.xlu0 %v1151_v10, %s2165_s24 }
 0x2f2   : > { %1155 = vrot.lane.b32.xlu1 %v2433_v9, %s2168_s28  ;;  %1153 = vrot.lane.b32.xlu0 %v1151_v10, %s2168_s28 }
 0x2f6   : > { %1398 = vperm.xlu0 %1960, %v1395_v11  }
 0x360   : > { %v1164_v12 = vpop.permute.xlu1 %1163  ;;  %v1162_v13 = vpop.permute.xlu0 %1161 }
 0x361   : > { %v1166_v14 = vsel %vm563_vm0, %v1164_v12, %v1162_v13  ;;  %v1165_v15 = vsel %vm563_vm0, %v1162_v13, %v1164_v12 }
 0x362   : > { %1202 = vmatprep.subr.mxu1 %v1165_v15 }
 0x363   : > { %1203 = vmatpush1.msra.mxu1 %v1166_v14 }
 0x364   : > { %v1156_v17 = vpop.permute.xlu1 %1155  ;;  %1841 = vmatmul.mubr.msk.f32.vlgmr.msra.gmra.mxu1 %vm576_vm2, %v1840_v16  ;;  %1352 = vmatprep.subr.mxu1 %v2433_v9  ;;  %v1154_v18 = vpop.permute.xlu0 %1153 }
 0x365   : > { %v1159_v19 = vsel %vm1157_vm3, %v1156_v17, %v1154_v18  ;;  %1353 = vmatpush1.msra.mxu1 %v1151_v10  ;;  %v1158_v20 = vsel %vm1157_vm3, %v1154_v18, %v1156_v17  ;;  %1386 = vmatprep.mubr.f32.mxu1 %v2166_v2 }
 0x366   : > { %1276 = vmatprep.subr.mxu0 %v1158_v20 }
 0x367   : > { %1277 = vmatpush1.msra.mxu0 %v1159_v19 }
 0x368   : > { %1842 = vmatmul.mubr.msk.f32.vlgmr.msra.gmra.mxu0 %vm576_vm2, %v1160_v21  ;;  %1844 = vmatmul.mubr.msk.f32.vlgmr.msra.gmra.mxu1 %vm576_vm2, %v1843_v22 }
 0x369   : > { %1489 = vmatprep.mubr.f32.mxu0 %v2166_v2  ;;  %1562 = vmatprep.mubr.f32.mxu1 %v2166_v2 }
 0x371   : > { %v1399_v31 = vpop.permute.xlu0 %1398 }
 0x424   : > { %v1238_v23 = vpop.f32.mrf.mxu1 }
 0x426   : > { %v1240_v24 = vpop.f32.mrf.mxu1 }
 0x428   : > { %v1312_v25 = vpop.f32.mrf.mxu0  ;;  %v1388_v26 = vpop.f32.mrf.mxu1 }
 0x429   : > { %v1313_v27 = vadd.f32 %v1312_v25, %v1238_v23 }
 0x42a   : > { %v1314_v28 = vpop.f32.mrf.mxu0  ;;  %v1390_v32 = vpop.f32.mrf.mxu1 }
 0x42b   : > { %v1393_v29 = vadd.f32 %v1388_v26, %v1313_v27  ;;  %v1315_v30 = vadd.f32 %v1314_v28, %v1240_v24 }
 0x42d   : > { %v1401_v33 = vadd.f32 %v1399_v31, %v1393_v29  ;;  %v1394_v34 = vadd.f32 %v1390_v32, %v1315_v30 }
 0x42f   : > { %v1403_v35 = vmax.f32 %v1401_v33, 0.0  ;;  %v1402_v36 = vadd.f32 %v1399_v31, %v1394_v34 }
 0x431   : > { %v1405_v37 = vmul.f32 0.0, %v1403_v35  ;;  %v1404_v38 = vmax.f32 %v1402_v36, 0.0 }
 0x433   : > { %1416 = vrot.lane.b32.xlu0 %v1404_v38, %s2165_s24  ;;  %1414 = vrot.lane.b32.xlu1 %v1405_v37, %s2165_s24  ;;  %s1849_s24 = sshll.u32 %s2148_s20, 7  ;;  %s2169_s20 = smov [#allocation12]  }
 0x434   : > { %s1669_s21 = scalar_lea.hbm %s2544_s11, %s1849_s24  ;;  %s2070_s19 = sshll.u32 %s2169_s20, 4  ;;  %s2071_s19 = int_to_ptr.vmem [resolvable:$false] %s2070_s19 }
 0x435   : > { %s2072_s23 = scalar_lea.vmem %s2071_s19, 256 }
 0x437   : > { %1409 = vrot.lane.b32.xlu0 %v1404_v38, %s2168_s28  ;;  %1407 = vrot.lane.b32.xlu1 %v1405_v37, %s2168_s28  ;;  %s1671_s28 = sshll.u32 %s409_s15, 4  ;;  %s1672_s28 = int_to_ptr.vmem [resolvable:$true] %s1671_s28 }
 0x438   : > { %s2066_s3 = scalar_lea.vmem %s1672_s28, 128  ;;  %p2073_p13 = scmp.lt.s32.totalorder %s1672_s28, %s2071_s19 }
 0x439   : > { %p2067_p4 = scmp.ne.s32.totalorder %s1672_s28, %s2066_s3  ;;  %p2074_p1 = scmp.lt.s32.totalorder %s2072_s23, %s2066_s3 }
 0x43b   : > { %1647 = vperm.xlu1 %1961, %v1644_v39   ;;  %p2068_p10 = pnand %p2067_p4, %p2563_p8  ;;  %p2075_p3 = por %p2074_p1, %p2073_p13 }
 0x43d   : > { %p2069_p11 = pneg %p2068_p10 }
 0x43f   : > { %p2076_p5 = pnand %p2075_p3, %p2069_p11 }
 0x4a5   : > { %v1417_v40 = vpop.permute.xlu0 %1416  ;;  %v1415_v41 = vpop.permute.xlu1 %1414 }
 0x4a6   : > { %v1419_v42 = vsel %vm563_vm0, %v1417_v40, %v1415_v41  ;;  %v1418_v43 = vsel %vm563_vm0, %v1415_v41, %v1417_v40 }
 0x4a7   : > { %1455 = vmatprep.subr.mxu0 %v1418_v43 }
 0x4a8   : > { %1456 = vmatpush1.msra.mxu0 %v1419_v42 }
 0x4a9   : > { %v1410_v45 = vpop.permute.xlu0 %1409  ;;  %1603 = vmatprep.subr.mxu0 %v1404_v38  ;;  %v1408_v46 = vpop.permute.xlu1 %1407  ;;  %1845 = vmatmul.mubr.msk.f32.vlgmr.msra.gmra.mxu0 %vm576_vm2, %v1421_v44 }
 0x4aa   : > { %v1412_v47 = vsel %vm1157_vm3, %v1410_v45, %v1408_v46  ;;  %1604 = vmatpush1.msra.mxu0 %v1405_v37  ;;  %v1411_v48 = vsel %vm1157_vm3, %v1408_v46, %v1410_v45  ;;  %1637 = vmatprep.mubr.f32.mxu0 %v2166_v2 }
 0x4ab   : > { %1528 = vmatprep.subr.mxu1 %v1411_v48 }
 0x4ac   : > { %1529 = vmatpush1.msra.mxu1 %v1412_v47 }
 0x4ad   : > { %1846 = vmatmul.mubr.msk.f32.vlgmr.msra.gmra.mxu1 %vm576_vm2, %v1413_v49  ;;  %1847 = vmatmul.mubr.msk.f32.vlgmr.msra.gmra.mxu0 %vm576_vm2, %v1569_v50 }
 0x4b6   : > { %v1648_v57 = vpop.permute.xlu1 %1647 }
 0x569   : > { %v1491_v51 = vpop.f32.mrf.mxu0 }
 0x56b   : > { %v1492_v52 = vpop.f32.mrf.mxu0 }
 0x56d   : > { %v1564_v53 = vpop.f32.mrf.mxu1  ;;  %v1639_v54 = vpop.f32.mrf.mxu0 }
 0x56f   : > { %v1565_v6 = vpop.f32.mrf.mxu1  ;;  %v1640_v56 = vpop.f32.mrf.mxu0 }
 0x570   : > { %v1566_v55 = vadd.f32 %v1565_v6, %v1492_v52 }
 0x572   : > { %v1643_v2 = vadd.f32 %v1640_v56, %v1566_v55 }
 0x574   : > { %v1650_v58 = vadd.f32 %v1648_v57, %v1643_v2 }
 0x576   : > { %v1651_v59 = vmax.f32 %v1650_v58, 0.0 }
 0x578   : > { %v1652_v60 = vadd.f32 %v1651_v59, %v2433_v9 }
 0x57a   : > { %v1653_v61 = vmax.f32 %v1652_v60, 0.0 }
 0x57c   : > { %1655 = vst [vmem:[%s409_s15] sm:$0xff] %v1653_v61 }
 0x57d   : > { %2079 = shalt.err (!%p2076_p5)
}
 0x57e   : > { %s2080_s12 = scalar_lea.hbm %s1669_s21, 128  ;;  %s2084_s15 = scalar_lea.hbm %s2544_s11, 256 }
 0x57f   : > { %p2081_p6 = scmp.ne.s32.totalorder %s1669_s21, %s2080_s12  ;;  %p2085_p12 = scmp.lt.s32.totalorder %s1669_s21, %s2544_s11 }
 0x580   : > { %p2086_p2 = scmp.lt.s32.totalorder %s2084_s15, %s2080_s12 }
 0x581   : > { %p2082_p7 = pnand %p2081_p6, %p2563_p8 }
 0x582   : > { %p2087_p0 = por %p2086_p2, %p2085_p12 }
 0x583   : > { %p2083_p9 = pneg %p2082_p7 }
 0x585   : > { %p2088_p4 = pnand %p2087_p0, %p2083_p9 }
 0x587   : > { %2091 = shalt.err (!%p2088_p4)
}
 0x588   : > { %1873 = dma.vmem_to_hbm [thread:$0]  (%p2563_p8), %s1672_s28, 128, %s1669_s21, %s1657_s26  }
 0x589 PF: > { %p1900_p10 = scmp.ge.s32.totalorder %s2156_s22, 2  ;;  %s1683_s25 = sand.u32 1, %s2136_s17  }
 0x58a   : > { %p2564_p11 = scmp.ne.s32.totalorder %s2556_s29, 0  ;;  %s1684_s13 = scalar_lea.sflag [#allocation6], %s1683_s25 }
 0x58c   : > { %p1889_p13 = pnand %p1900_p10, %p2564_p11 }
 0x58e   : > { %p1890_p1 = pneg %p1889_p13 }
 0x590   : > { %2131 = dma.done.wait (%p1890_p1), %s1684_s13, 128  }
 0x591   : > { %2133 = vsyncadd (%p1890_p1), %s1684_s13, 4294967168  ;;  %s27_s22 = sadd.s32 1, %s2156_s22   ;;  %s2565_s3 = sld [smem:[#allocation20_spill]] }
 0x592   : > { %p24_p3 = scmp.ge.s32.totalorder %s27_s22, 4   ;;  %s2566_s19 = sld [smem:[#allocation23_spill]] }
 0x593   : > { %s2567_s20 = sld [smem:[#allocation21_spill]]  ;;  %s2569_s17 = smov %s2140_s18 }
 0x594   : > { %s2568_s21 = sld [smem:[#allocation22_spill]]  ;;  %26 = sbr.rel (!%p24_p3) target bundleno = 9 (0x9), region = 218 }
 0x597   : > { %s2570_s18 = smov %s2565_s3 }
 0x599   :  { %1689 = vsyncpa [#allocation5], 1 }
 0x59a   :  { %1691 = vsyncpa [#allocation5 + $0x1], 1 }
 0x59b   :  { %1692 = vsyncpa [#allocation8], 1 }
 0x59c   :  { %1693 = vsyncpa [#allocation11], 1 }
 0x59d   :  { %1694 = vsyncpa [#allocation6], 1 }
 0x59e   :  { %1696 = vsyncpa [#allocation6 + $0x1], 1 }
 0x59f   :  { %1697 = vsyncmov [#allocation3] }
 0x5a2   :  { %s1698_s27 = vpop.sfrf %1697 }
 0x5a3   :  { %p1852_p8 = scmp.ne.s32.totalorder %s1698_s27, 0 }
 0x5a5   :  { %1702 = shalt.err (%p1852_p8)  }
 0x5a6   :  { %1704 = vsyncmov [#allocation3 + $0x1] }
 0x5a9   :  { %s1705_s29 = vpop.sfrf %1704 }
 0x5aa   :  { %p1853_p5 = scmp.ne.s32.totalorder %s1705_s29, 0 }
 0x5ac   :  { %1709 = shalt.err (%p1853_p5)  }

</bundles_post_ra>
